<compile_context>
chip_gen: v7x
topology: tpu7x:2x2x1
jax: 0.10.0
libtpu: 0.0.40
codegen_flags: <defaults>
</compile_context>

<pallas_src>
import math
import functools

import jax
import jax.numpy as jnp
from jax import lax
from jax.experimental import pallas as pl
from jax.experimental.pallas import tpu as pltpu


def _pick_vmem_limit():
    """Generation-aware scoped-VMEM limit: 48 MiB on 128 MiB parts (v5e/v6e),
    40 MiB on 64 MiB parts (v7x) / unknown, leaving compiler-scratch headroom."""
    try:
        cap = pltpu.get_tpu_info().vmem_capacity_bytes
    except Exception:
        cap = None
    if cap is not None and cap >= 100 * 1024 * 1024:
        return 48 * 1024 * 1024
    return 40 * 1024 * 1024


_VMEM_LIMIT = _pick_vmem_limit()


def _row_tile(dim, target):
    """Largest 8-aligned divisor of `dim` that is <= target (full dim when small
    or when no aligned divisor exists -- a full-extent block is always legal)."""
    if dim <= target:
        return dim
    t = (min(target, dim) // 8) * 8
    while t >= 8:
        if dim % t == 0:
            return t
        t -= 8
    return dim


# --------------------------------------------------------------------------
# Kernel 1: fused Q/K/V projection, head-major outputs.
#   x_ref : (tm, d_model)        bf16
#   w_ref : (d_model, 3*d_k)     bf16   (this head's [Wq | Wk | Wv] columns)
#   q/k/v : (tm, d_k)            bf16   head-major output tiles
# --------------------------------------------------------------------------
def _qkv_proj_kernel(x_ref, w_ref, q_ref, k_ref, v_ref, *, d_k, q_scale):
    y = jnp.dot(x_ref[...], w_ref[...], preferred_element_type=jnp.float32)
    q_ref[...] = (y[:, :d_k] * q_scale).astype(q_ref.dtype)
    k_ref[...] = y[:, d_k:2 * d_k].astype(k_ref.dtype)
    v_ref[...] = y[:, 2 * d_k:].astype(v_ref.dtype)


def qkv_projection(x, w_qkv, *, n_head, d_k, tm_target=1024):
    B, L, d_model = x.shape
    tm = _row_tile(L, tm_target)
    kernel = functools.partial(_qkv_proj_kernel, d_k=d_k,
                               q_scale=1.0 / math.sqrt(d_k))
    out_sds = jax.ShapeDtypeStruct((B, n_head, L, d_k), jnp.bfloat16)
    return pl.pallas_call(
        kernel,
        out_shape=(out_sds, out_sds, out_sds),
        grid_spec=pltpu.PrefetchScalarGridSpec(
            num_scalar_prefetch=0,
            grid=(B, L // tm, n_head),
            in_specs=[
                pl.BlockSpec((None, tm, d_model), lambda b, i, h: (b, i, 0)),
                pl.BlockSpec((None, d_model, 3 * d_k), lambda b, i, h: (h, 0, 0)),
            ],
            out_specs=(
                pl.BlockSpec((None, None, tm, d_k), lambda b, i, h: (b, h, i, 0)),
                pl.BlockSpec((None, None, tm, d_k), lambda b, i, h: (b, h, i, 0)),
                pl.BlockSpec((None, None, tm, d_k), lambda b, i, h: (b, h, i, 0)),
            )),
        compiler_params=pltpu.CompilerParams(
            dimension_semantics=("parallel", "parallel", "parallel"),
            vmem_limit_bytes=_VMEM_LIMIT),
    )(x, w_qkv)


# --------------------------------------------------------------------------
# Kernel 2: prob-sparse attention core, grid (B, H).  Q is never DMA'd here.
#   k_ref    : (L, d_k)      bf16
#   v_ref    : (L, d_k)      bf16
#   qred_ref : (n_top, d_k)  bf16   (already scaled by 1/sqrt(d_k))
#   idx_ref  : (1, n_top)    int32  top-query row indices
#   ctx_ref  : (L, d_k)      bf16   head-major context output
# --------------------------------------------------------------------------
def _probsparse_kernel(k_ref, v_ref, qred_ref, idx_ref, ctx_ref):
    L = k_ref.shape[0]
    n_top = qred_ref.shape[0]

    k = k_ref[...]
    v = v_ref[...]
    qred = qred_ref[...]
    idx = idx_ref[...]                                            # (1, n_top)

    # scores = Q_reduce @ K^T  (rhs-contracted dot_general, bf16 -> f32 accum)
    scores = lax.dot_general(qred, k, (((1,), (1,)), ((), ())),
                             preferred_element_type=jnp.float32)  # (n_top, L)

    # exact softmax (no approx reciprocal) in f32
    m = jnp.max(scores, axis=-1, keepdims=True)
    p = jnp.exp(scores - m)
    attn = p / jnp.sum(p, axis=-1, keepdims=True)

    out_top = jnp.dot(attn.astype(v.dtype), v,
                      preferred_element_type=jnp.float32)         # (n_top, d_k)

    # V-mean initial context (single sublane reduction per head/step)
    v_mean = jnp.mean(v.astype(jnp.float32), axis=0, keepdims=True)   # (1, d_k)

    # index scatter as one bf16 one-hot matmul (exact: one-hot is 0/1)
    row_ids = lax.broadcasted_iota(jnp.int32, (L, n_top), 0)
    one_hot = (row_ids == idx).astype(jnp.bfloat16)               # (L, n_top)
    scattered = jnp.dot(one_hot, out_top.astype(jnp.bfloat16),
                        preferred_element_type=jnp.float32)       # (L, d_k)
    keep = 1.0 - jnp.sum(one_hot.astype(jnp.float32), axis=1, keepdims=True)

    ctx_ref[...] = (keep * v_mean + scattered).astype(ctx_ref.dtype)


def probsparse_attention(k, v, q_red, idx4):
    B, H, L, d_k = k.shape
    n_top = q_red.shape[2]
    blk_lk = pl.BlockSpec((None, None, L, d_k), lambda b, h: (b, h, 0, 0))
    return pl.pallas_call(
        _probsparse_kernel,
        out_shape=jax.ShapeDtypeStruct((B, H, L, d_k), jnp.bfloat16),
        grid_spec=pltpu.PrefetchScalarGridSpec(
            num_scalar_prefetch=0,
            grid=(B, H),
            in_specs=[
                blk_lk,                                                        # K_h
                blk_lk,                                                        # V_h
                pl.BlockSpec((None, None, n_top, d_k), lambda b, h: (b, h, 0, 0)),
                pl.BlockSpec((None, None, 1, n_top), lambda b, h: (b, h, 0, 0)),
            ],
            out_specs=pl.BlockSpec((None, None, L, d_k), lambda b, h: (b, h, 0, 0))),
        compiler_params=pltpu.CompilerParams(
            dimension_semantics=("parallel", "parallel"),
            vmem_limit_bytes=_VMEM_LIMIT),
    )(k, v, q_red, idx4)


# --------------------------------------------------------------------------
# Kernel 3: fc + bias + residual + LayerNorm, head-reduction grid (B, rows, H).
#   ctx_ref : (tm, d_k)       bf16  (head h slice of the context)
#   w_ref   : (d_k, d_model)  bf16  (head h rows of W_fc)
#   res_ref : (tm, d_model)   f32
#   acc_ref : (tm, d_model)   f32 scratch accumulator
# --------------------------------------------------------------------------
def _fc_res_ln_kernel(ctx_ref, w_ref, res_ref, b_ref, g_ref, beta_ref,
                      o_ref, acc_ref):
    h = pl.program_id(2)

    @pl.when(h == 0)
    def _():
        acc_ref[...] = jnp.zeros_like(acc_ref)

    acc_ref[...] += jnp.dot(ctx_ref[...], w_ref[...],
                            preferred_element_type=jnp.float32)

    @pl.when(h == pl.num_programs(2) - 1)
    def _():
        y = acc_ref[...] + b_ref[...] + res_ref[...]
        mean = jnp.mean(y, axis=-1, keepdims=True)
        var = jnp.mean(jnp.square(y - mean), axis=-1, keepdims=True)
        y = (y - mean) * lax.rsqrt(var + 1e-6)
        o_ref[...] = (y * g_ref[...] + beta_ref[...]).astype(o_ref.dtype)


def fc_residual_layernorm(ctx, residual, w_fc3, b_fc, gamma, beta, *,
                          tm_target=512):
    B, H, L, d_k = ctx.shape
    d_model = w_fc3.shape[-1]
    tm = _row_tile(L, tm_target)
    return pl.pallas_call(
        _fc_res_ln_kernel,
        out_shape=jax.ShapeDtypeStruct((B, L, d_model), jnp.float32),
        grid_spec=pltpu.PrefetchScalarGridSpec(
            num_scalar_prefetch=0,
            grid=(B, L // tm, H),
            in_specs=[
                pl.BlockSpec((None, None, tm, d_k), lambda b, i, h: (b, h, i, 0)),
                pl.BlockSpec((None, d_k, d_model), lambda b, i, h: (h, 0, 0)),
                pl.BlockSpec((None, tm, d_model), lambda b, i, h: (b, i, 0)),
                pl.BlockSpec((1, d_model), lambda b, i, h: (0, 0)),
                pl.BlockSpec((1, d_model), lambda b, i, h: (0, 0)),
                pl.BlockSpec((1, d_model), lambda b, i, h: (0, 0)),
            ],
            out_specs=pl.BlockSpec((None, tm, d_model), lambda b, i, h: (b, i, 0)),
            scratch_shapes=[pltpu.VMEM((tm, d_model), jnp.float32)]),
        compiler_params=pltpu.CompilerParams(
            dimension_semantics=("parallel", "parallel", "arbitrary"),
            vmem_limit_bytes=_VMEM_LIMIT),
    )(ctx, w_fc3, residual, b_fc, gamma, beta)


# --------------------------------------------------------------------------
# Plain-JAX glue: prob-sparse query selection (random sampling + top-k),
# head-major (B, H, L, E) layout, bf16 gather/einsum with f32 accumulation.
# --------------------------------------------------------------------------
def _prob_qk_select(q, k, sample_k, n_top, key):
    # TODO(synk): the sampled-K gather + top-k has no clean Pallas equivalent
    #             yet; at large L move it into a scalar-prefetch DMA-gather
    #             kernel.  Kept here in bf16 to halve its HBM traffic.
    B, H, L, E = k.shape
    index_sample = jax.random.randint(key, (L, sample_k), 0, L)        # (L, S)
    k_sample = k[:, :, index_sample, :]                                # (B,H,L,S,E) bf16
    qk = jnp.einsum('bhle,bhlse->bhls', q, k_sample,
                    preferred_element_type=jnp.float32)                # (B,H,L,S) f32
    M = qk.max(axis=-1) - qk.sum(axis=-1) / L                          # (B,H,L)
    idx = lax.top_k(M, n_top)[1].astype(jnp.int32)                     # (B,H,n_top)

    b_idx = jnp.arange(B)[:, None, None]
    h_idx = jnp.arange(H)[None, :, None]
    q_red = q[b_idx, h_idx, idx]                                       # (B,H,n_top,E) bf16
    return q_red, idx


# --------------------------------------------------------------------------
# Full forward pass (normalize_before = False, dropout = eval-mode identity)
# --------------------------------------------------------------------------
@functools.partial(jax.jit, static_argnames=("n_head", "d_k", "factor"))
def prob_sparse_attention_forward(hidden_states, params, sample_key, *,
                                  n_head, d_k, factor):
    B, L, d_model = hidden_states.shape
    residual = hidden_states.astype(jnp.float32)

    # fused per-head Q/K/V projection, head-major bf16 outputs (q pre-scaled)
    q, k, v = qkv_projection(hidden_states.astype(jnp.bfloat16),
                             params["w_qkv"].astype(jnp.bfloat16),
                             n_head=n_head, d_k=d_k)                    # (B,H,L,dk) x3

    U_part = int(factor * math.ceil(math.log(L)))
    U_part = min(U_part, L)
    u = U_part

    q_red, index = _prob_qk_select(q, k, U_part, u, sample_key)         # (B,H,u,dk),(B,H,u)
    idx4 = index.reshape(B, n_head, 1, u)

    # prob-sparse attention core + V-mean context + index scatter (Pallas)
    ctx = probsparse_attention(k, v, q_red, idx4)                       # (B,H,L,dk) bf16

    # fc + bias + residual + layer_norm, head-reduction fused kernel
    out = fc_residual_layernorm(ctx, residual,
                                params["w_fc3"].astype(jnp.bfloat16),
                                params["b_fc"], params["gamma"],
                                params["beta"])                         # (B,L,d_model) f32
    return out


# --------------------------------------------------------------------------
# Deterministic parameter initialization (xavier_uniform like the module)
# --------------------------------------------------------------------------
def init_params(key, d_model, n_head, d_k):
    k1, k2, k3, k4, k5 = jax.random.split(key, 5)
    hdk = n_head * d_k

    def xavier(kk, fan_in, fan_out):
        bound = math.sqrt(6.0 / (fan_in + fan_out))
        return jax.random.uniform(kk, (fan_in, fan_out), jnp.float32, -bound, bound)

    w_q = xavier(k1, d_model, hdk).reshape(d_model, n_head, d_k)
    w_k = xavier(k2, d_model, hdk).reshape(d_model, n_head, d_k)
    w_v = xavier(k3, d_model, hdk).reshape(d_model, n_head, d_k)
    # (H, d_model, 3*d_k): per-head fused [q | k | v] output columns
    w_qkv = jnp.transpose(jnp.concatenate([w_q, w_k, w_v], axis=-1), (1, 0, 2))

    w_fc = xavier(k4, hdk, d_model)                      # (hdk, d_model)
    w_fc3 = w_fc.reshape(n_head, d_k, d_model)           # (H, d_k, d_model)
    b_bound = 1.0 / math.sqrt(hdk)
    b_fc = jax.random.uniform(k5, (1, d_model), jnp.float32, -b_bound, b_bound)
    return {
        "w_qkv": w_qkv,
        "w_fc3": w_fc3,
        "b_fc": b_fc,
        "gamma": jnp.ones((1, d_model), jnp.float32),
        "beta": jnp.zeros((1, d_model), jnp.float32),
    }


if __name__ == "__main__":
    key = jax.random.PRNGKey(0)
    k_param, k_x, k_sample = jax.random.split(key, 3)

    B, L, d_model, n_head, d_k, factor = 2, 16, 32, 4, 8, 2

    params = init_params(k_param, d_model, n_head, d_k)
    hidden_states = jax.random.normal(k_x, (B, L, d_model), jnp.float32)

    out = prob_sparse_attention_forward(hidden_states, params, k_sample,
                                        n_head=n_head, d_k=d_k, factor=factor)
    out = jax.block_until_ready(out)
    assert out.shape == (B, L, d_model)
    assert bool(jnp.all(jnp.isfinite(out)))
    print("KERNEL_OK")
</pallas_src>

<mosaic_0001>
module attributes {stable_mosaic.version = 11 : i64} {
  func.func @_qkv_proj_kernel(%arg0: i32, %arg1: i32, %arg2: i32, %arg3: memref<1x16x32xbf16, #tpu.memory_space<vmem>>, %arg4: memref<1x32x24xbf16, #tpu.memory_space<vmem>>, %arg5: memref<1x1x16x8xbf16, #tpu.memory_space<vmem>>, %arg6: memref<1x1x16x8xbf16, #tpu.memory_space<vmem>>, %arg7: memref<1x1x16x8xbf16, #tpu.memory_space<vmem>>) attributes {dimension_semantics = [#tpu.dimension_semantics<parallel>, #tpu.dimension_semantics<parallel>, #tpu.dimension_semantics<parallel>], iteration_bounds = array<i64: 2, 1, 4>, scalar_prefetch = 0 : i64, scratch_operands = 0 : i64, tpu.core_type = #tpu.core_type<tc>, window_params = [{transform_indices = @transform_0, window_bounds = array<i64: 1, 16, 32>}, {transform_indices = @transform_1, window_bounds = array<i64: 1, 32, 24>}, {transform_indices = @transform_2, window_bounds = array<i64: 1, 1, 16, 8>}, {transform_indices = @transform_3, window_bounds = array<i64: 1, 1, 16, 8>}, {transform_indices = @transform_4, window_bounds = array<i64: 1, 1, 16, 8>}]} {
    %c0 = arith.constant 0 : index
    %c0_0 = arith.constant 0 : index
    %c0_1 = arith.constant 0 : index
    %0 = vector.load %arg3[%c0, %c0_0, %c0_1] : memref<1x16x32xbf16, #tpu.memory_space<vmem>>, vector<1x16x32xbf16>
    %1 = vector.shape_cast %0 : vector<1x16x32xbf16> to vector<16x32xbf16>
    %c0_2 = arith.constant 0 : index
    %c0_3 = arith.constant 0 : index
    %c0_4 = arith.constant 0 : index
    %2 = vector.load %arg4[%c0_2, %c0_3, %c0_4] : memref<1x32x24xbf16, #tpu.memory_space<vmem>>, vector<1x32x24xbf16>
    %3 = vector.shape_cast %2 : vector<1x32x24xbf16> to vector<32x24xbf16>
    %cst = arith.constant dense<0.000000e+00> : vector<16x24xf32>
    %4 = tpu.matmul %1, %3, %cst {dimension_numbers = #tpu.dot_dimension_numbers<[1], [0], [0], [1], [0, 0, 1, 1], [], []>} : vector<16x32xbf16>, vector<32x24xbf16>, vector<16x24xf32> -> vector<16x24xf32>
    %5 = vector.extract_strided_slice %4 {offsets = [0, 0], sizes = [16, 8], strides = [1, 1]} : vector<16x24xf32> to vector<16x8xf32>
    %cst_5 = arith.constant 0.353553385 : f32
    %6 = vector.broadcast %cst_5 : f32 to vector<16x8xf32>
    %7 = arith.mulf %5, %6 : vector<16x8xf32>
    %8 = arith.truncf %7 : vector<16x8xf32> to vector<16x8xbf16>
    %c0_6 = arith.constant 0 : index
    %c0_7 = arith.constant 0 : index
    %c0_8 = arith.constant 0 : index
    %c0_9 = arith.constant 0 : index
    %9 = vector.load %arg5[%c0_6, %c0_7, %c0_8, %c0_9] : memref<1x1x16x8xbf16, #tpu.memory_space<vmem>>, vector<1x1x16x8xbf16>
    %10 = vector.shape_cast %9 : vector<1x1x16x8xbf16> to vector<16x8xbf16>
    %11 = vector.shape_cast %8 : vector<16x8xbf16> to vector<1x1x16x8xbf16>
    tpu.vector_store %arg5[%c0_6, %c0_7, %c0_8, %c0_9], %11 {strides = array<i32>} : memref<1x1x16x8xbf16, #tpu.memory_space<vmem>>, vector<1x1x16x8xbf16>,
    %12 = vector.extract_strided_slice %4 {offsets = [0, 8], sizes = [16, 8], strides = [1, 1]} : vector<16x24xf32> to vector<16x8xf32>
    %13 = arith.truncf %12 : vector<16x8xf32> to vector<16x8xbf16>
    %c0_10 = arith.constant 0 : index
    %c0_11 = arith.constant 0 : index
    %c0_12 = arith.constant 0 : index
    %c0_13 = arith.constant 0 : index
    %14 = vector.load %arg6[%c0_10, %c0_11, %c0_12, %c0_13] : memref<1x1x16x8xbf16, #tpu.memory_space<vmem>>, vector<1x1x16x8xbf16>
    %15 = vector.shape_cast %14 : vector<1x1x16x8xbf16> to vector<16x8xbf16>
    %16 = vector.shape_cast %13 : vector<16x8xbf16> to vector<1x1x16x8xbf16>
    tpu.vector_store %arg6[%c0_10, %c0_11, %c0_12, %c0_13], %16 {strides = array<i32>} : memref<1x1x16x8xbf16, #tpu.memory_space<vmem>>, vector<1x1x16x8xbf16>,
    %17 = vector.extract_strided_slice %4 {offsets = [0, 16], sizes = [16, 8], strides = [1, 1]} : vector<16x24xf32> to vector<16x8xf32>
    %18 = arith.truncf %17 : vector<16x8xf32> to vector<16x8xbf16>
    %c0_14 = arith.constant 0 : index
    %c0_15 = arith.constant 0 : index
    %c0_16 = arith.constant 0 : index
    %c0_17 = arith.constant 0 : index
    %19 = vector.load %arg7[%c0_14, %c0_15, %c0_16, %c0_17] : memref<1x1x16x8xbf16, #tpu.memory_space<vmem>>, vector<1x1x16x8xbf16>
    %20 = vector.shape_cast %19 : vector<1x1x16x8xbf16> to vector<16x8xbf16>
    %21 = vector.shape_cast %18 : vector<16x8xbf16> to vector<1x1x16x8xbf16>
    tpu.vector_store %arg7[%c0_14, %c0_15, %c0_16, %c0_17], %21 {strides = array<i32>} : memref<1x1x16x8xbf16, #tpu.memory_space<vmem>>, vector<1x1x16x8xbf16>,
    return
  }
  func.func @transform_0(%arg0: i32, %arg1: i32, %arg2: i32) -> (i32, i32, i32) {
    %c0_i32 = arith.constant 0 : i32
    %c0_i32_0 = arith.constant 0 : i32
    return %arg0, %arg1, %c0_i32 : i32, i32, i32
  }
  func.func @transform_1(%arg0: i32, %arg1: i32, %arg2: i32) -> (i32, i32, i32) {
    %c0_i32 = arith.constant 0 : i32
    %c0_i32_0 = arith.constant 0 : i32
    %c0_i32_1 = arith.constant 0 : i32
    return %arg2, %c0_i32, %c0_i32_0 : i32, i32, i32
  }
  func.func @transform_2(%arg0: i32, %arg1: i32, %arg2: i32) -> (i32, i32, i32, i32) {
    %c0_i32 = arith.constant 0 : i32
    %c0_i32_0 = arith.constant 0 : i32
    return %arg0, %arg2, %arg1, %c0_i32 : i32, i32, i32, i32
  }
  func.func @transform_3(%arg0: i32, %arg1: i32, %arg2: i32) -> (i32, i32, i32, i32) {
    %c0_i32 = arith.constant 0 : i32
    %c0_i32_0 = arith.constant 0 : i32
    return %arg0, %arg2, %arg1, %c0_i32 : i32, i32, i32, i32
  }
  func.func @transform_4(%arg0: i32, %arg1: i32, %arg2: i32) -> (i32, i32, i32, i32) {
    %c0_i32 = arith.constant 0 : i32
    %c0_i32_0 = arith.constant 0 : i32
    return %arg0, %arg2, %arg1, %c0_i32 : i32, i32, i32, i32
  }
}

module attributes {stable_mosaic.version = 11 : i64} {
  func.func @_fc_res_ln_kernel(%arg0: i32, %arg1: i32, %arg2: i32, %arg3: memref<1x1x16x8xbf16, #tpu.memory_space<vmem>>, %arg4: memref<1x8x32xbf16, #tpu.memory_space<vmem>>, %arg5: memref<1x16x32xf32, #tpu.memory_space<vmem>>, %arg6: memref<1x32xf32, #tpu.memory_space<vmem>>, %arg7: memref<1x32xf32, #tpu.memory_space<vmem>>, %arg8: memref<1x32xf32, #tpu.memory_space<vmem>>, %arg9: memref<1x16x32xf32, #tpu.memory_space<vmem>>, %arg10: memref<16x32xf32, #tpu.memory_space<vmem>>) attributes {dimension_semantics = [#tpu.dimension_semantics<parallel>, #tpu.dimension_semantics<parallel>, #tpu.dimension_semantics<arbitrary>], iteration_bounds = array<i64: 2, 1, 4>, scalar_prefetch = 0 : i64, scratch_operands = 1 : i64, tpu.core_type = #tpu.core_type<tc>, window_params = [{transform_indices = @transform_0, window_bounds = array<i64: 1, 1, 16, 8>}, {transform_indices = @transform_1, window_bounds = array<i64: 1, 8, 32>}, {transform_indices = @transform_2, window_bounds = array<i64: 1, 16, 32>}, {pipeline_mode = #tpu.pipeline_mode<synchronous>, transform_indices = @transform_3, window_bounds = array<i64: 1, 32>}, {pipeline_mode = #tpu.pipeline_mode<synchronous>, transform_indices = @transform_4, window_bounds = array<i64: 1, 32>}, {pipeline_mode = #tpu.pipeline_mode<synchronous>, transform_indices = @transform_5, window_bounds = array<i64: 1, 32>}, {transform_indices = @transform_6, window_bounds = array<i64: 1, 16, 32>}]} {
    %c0_i32 = arith.constant 0 : i32
    %0 = arith.cmpi eq, %arg2, %c0_i32 : i32
    %1 = arith.extui %0 : i1 to i32
    %c0_i32_0 = arith.constant 0 : i32
    %2 = arith.cmpi ne, %1, %c0_i32_0 : i32
    scf.if %2 {
      %cst_12 = arith.constant 0.000000e+00 : f32
      %14 = vector.broadcast %cst_12 : f32 to vector<16x32xf32>
      %c0_13 = arith.constant 0 : index
      %c0_14 = arith.constant 0 : index
      %15 = vector.load %arg10[%c0_13, %c0_14] : memref<16x32xf32, #tpu.memory_space<vmem>>, vector<16x32xf32>
      tpu.vector_store %arg10[%c0_13, %c0_14], %14 {strides = array<i32>} : memref<16x32xf32, #tpu.memory_space<vmem>>, vector<16x32xf32>,
    } else {
    }
    %c0 = arith.constant 0 : index
    %c0_1 = arith.constant 0 : index
    %3 = vector.load %arg10[%c0, %c0_1] : memref<16x32xf32, #tpu.memory_space<vmem>>, vector<16x32xf32>
    %c0_2 = arith.constant 0 : index
    %c0_3 = arith.constant 0 : index
    %c0_4 = arith.constant 0 : index
    %c0_5 = arith.constant 0 : index
    %4 = vector.load %arg3[%c0_2, %c0_3, %c0_4, %c0_5] : memref<1x1x16x8xbf16, #tpu.memory_space<vmem>>, vector<1x1x16x8xbf16>
    %5 = vector.shape_cast %4 : vector<1x1x16x8xbf16> to vector<16x8xbf16>
    %c0_6 = arith.constant 0 : index
    %c0_7 = arith.constant 0 : index
    %c0_8 = arith.constant 0 : index
    %6 = vector.load %arg4[%c0_6, %c0_7, %c0_8] : memref<1x8x32xbf16, #tpu.memory_space<vmem>>, vector<1x8x32xbf16>
    %7 = vector.shape_cast %6 : vector<1x8x32xbf16> to vector<8x32xbf16>
    %cst = arith.constant dense<0.000000e+00> : vector<16x32xf32>
    %8 = tpu.matmul %5, %7, %cst {dimension_numbers = #tpu.dot_dimension_numbers<[1], [0], [0], [1], [0, 0, 1, 1], [], []>} : vector<16x8xbf16>, vector<8x32xbf16>, vector<16x32xf32> -> vector<16x32xf32>
    %9 = arith.addf %3, %8 : vector<16x32xf32>
    %c0_9 = arith.constant 0 : index
    %c0_10 = arith.constant 0 : index
    %10 = vector.load %arg10[%c0_9, %c0_10] : memref<16x32xf32, #tpu.memory_space<vmem>>, vector<16x32xf32>
    tpu.vector_store %arg10[%c0_9, %c0_10], %9 {strides = array<i32>} : memref<16x32xf32, #tpu.memory_space<vmem>>, vector<16x32xf32>,
    %c3_i32 = arith.constant 3 : i32
    %11 = arith.cmpi eq, %arg2, %c3_i32 : i32
    %12 = arith.extui %11 : i1 to i32
    %c0_i32_11 = arith.constant 0 : i32
    %13 = arith.cmpi ne, %12, %c0_i32_11 : i32
    scf.if %13 {
      %c0_12 = arith.constant 0 : index
      %c0_13 = arith.constant 0 : index
      %14 = vector.load %arg10[%c0_12, %c0_13] : memref<16x32xf32, #tpu.memory_space<vmem>>, vector<16x32xf32>
      %c0_14 = arith.constant 0 : index
      %c0_15 = arith.constant 0 : index
      %15 = vector.load %arg6[%c0_14, %c0_15] : memref<1x32xf32, #tpu.memory_space<vmem>>, vector<1x32xf32>
      %16 = vector.broadcast %15 : vector<1x32xf32> to vector<16x32xf32>
      %17 = arith.addf %14, %16 : vector<16x32xf32>
      %c0_16 = arith.constant 0 : index
      %c0_17 = arith.constant 0 : index
      %c0_18 = arith.constant 0 : index
      %18 = vector.load %arg5[%c0_16, %c0_17, %c0_18] : memref<1x16x32xf32, #tpu.memory_space<vmem>>, vector<1x16x32xf32>
      %19 = vector.shape_cast %18 : vector<1x16x32xf32> to vector<16x32xf32>
      %20 = arith.addf %17, %19 : vector<16x32xf32>
      %cst_19 = arith.constant dense<0.000000e+00> : vector<16xf32>
      %21 = vector.multi_reduction <add>, %20, %cst_19 [1] : vector<16x32xf32> to vector<16xf32>
      %22 = vector.shape_cast %21 : vector<16xf32> to vector<16x1xf32>
      %cst_20 = arith.constant 3.200000e+01 : f32
      %23 = vector.broadcast %cst_20 : f32 to vector<16x1xf32>
      %24 = arith.divf %22, %23 : vector<16x1xf32>
      %25 = vector.broadcast %24 : vector<16x1xf32> to vector<16x32xf32>
      %26 = arith.subf %20, %25 : vector<16x32xf32>
      %27 = arith.mulf %26, %26 : vector<16x32xf32>
      %cst_21 = arith.constant dense<0.000000e+00> : vector<16xf32>
      %28 = vector.multi_reduction <add>, %27, %cst_21 [1] : vector<16x32xf32> to vector<16xf32>
      %29 = vector.shape_cast %28 : vector<16xf32> to vector<16x1xf32>
      %cst_22 = arith.constant 3.200000e+01 : f32
      %30 = vector.broadcast %cst_22 : f32 to vector<16x1xf32>
      %31 = arith.divf %29, %30 : vector<16x1xf32>
      %32 = vector.broadcast %24 : vector<16x1xf32> to vector<16x32xf32>
      %33 = arith.subf %20, %32 : vector<16x32xf32>
      %cst_23 = arith.constant 9.99999997E-7 : f32
      %34 = vector.broadcast %cst_23 : f32 to vector<16x1xf32>
      %35 = arith.addf %31, %34 : vector<16x1xf32>
      %36 = math.rsqrt %35 : vector<16x1xf32>
      %37 = vector.broadcast %36 : vector<16x1xf32> to vector<16x32xf32>
      %38 = arith.mulf %33, %37 : vector<16x32xf32>
      %c0_24 = arith.constant 0 : index
      %c0_25 = arith.constant 0 : index
      %39 = vector.load %arg7[%c0_24, %c0_25] : memref<1x32xf32, #tpu.memory_space<vmem>>, vector<1x32xf32>
      %40 = vector.broadcast %39 : vector<1x32xf32> to vector<16x32xf32>
      %41 = arith.mulf %38, %40 : vector<16x32xf32>
      %c0_26 = arith.constant 0 : index
      %c0_27 = arith.constant 0 : index
      %42 = vector.load %arg8[%c0_26, %c0_27] : memref<1x32xf32, #tpu.memory_space<vmem>>, vector<1x32xf32>
      %43 = vector.broadcast %42 : vector<1x32xf32> to vector<16x32xf32>
      %44 = arith.addf %41, %43 : vector<16x32xf32>
      %c0_28 = arith.constant 0 : index
      %c0_29 = arith.constant 0 : index
      %c0_30 = arith.constant 0 : index
      %45 = vector.load %arg9[%c0_28, %c0_29, %c0_30] : memref<1x16x32xf32, #tpu.memory_space<vmem>>, vector<1x16x32xf32>
      %46 = vector.shape_cast %45 : vector<1x16x32xf32> to vector<16x32xf32>
      %47 = vector.shape_cast %44 : vector<16x32xf32> to vector<1x16x32xf32>
      tpu.vector_store %arg9[%c0_28, %c0_29, %c0_30], %47 {strides = array<i32>} : memref<1x16x32xf32, #tpu.memory_space<vmem>>, vector<1x16x32xf32>,
    } else {
    }
    return
  }
  func.func @transform_0(%arg0: i32, %arg1: i32, %arg2: i32) -> (i32, i32, i32, i32) {
    %c0_i32 = arith.constant 0 : i32
    %c0_i32_0 = arith.constant 0 : i32
    return %arg0, %arg2, %arg1, %c0_i32 : i32, i32, i32, i32
  }
  func.func @transform_1(%arg0: i32, %arg1: i32, %arg2: i32) -> (i32, i32, i32) {
    %c0_i32 = arith.constant 0 : i32
    %c0_i32_0 = arith.constant 0 : i32
    %c0_i32_1 = arith.constant 0 : i32
    return %arg2, %c0_i32, %c0_i32_0 : i32, i32, i32
  }
  func.func @transform_2(%arg0: i32, %arg1: i32, %arg2: i32) -> (i32, i32, i32) {
    %c0_i32 = arith.constant 0 : i32
    %c0_i32_0 = arith.constant 0 : i32
    return %arg0, %arg1, %c0_i32 : i32, i32, i32
  }
  func.func @transform_3(%arg0: i32, %arg1: i32, %arg2: i32) -> (i32, i32) {
    %c0_i32 = arith.constant 0 : i32
    %c0_i32_0 = arith.constant 0 : i32
    %c0_i32_1 = arith.constant 0 : i32
    return %c0_i32, %c0_i32_0 : i32, i32
  }
  func.func @transform_4(%arg0: i32, %arg1: i32, %arg2: i32) -> (i32, i32) {
    %c0_i32 = arith.constant 0 : i32
    %c0_i32_0 = arith.constant 0 : i32
    %c0_i32_1 = arith.constant 0 : i32
    return %c0_i32, %c0_i32_0 : i32, i32
  }
  func.func @transform_5(%arg0: i32, %arg1: i32, %arg2: i32) -> (i32, i32) {
    %c0_i32 = arith.constant 0 : i32
    %c0_i32_0 = arith.constant 0 : i32
    %c0_i32_1 = arith.constant 0 : i32
    return %c0_i32, %c0_i32_0 : i32, i32
  }
  func.func @transform_6(%arg0: i32, %arg1: i32, %arg2: i32) -> (i32, i32, i32) {
    %c0_i32 = arith.constant 0 : i32
    %c0_i32_0 = arith.constant 0 : i32
    return %arg0, %arg1, %c0_i32 : i32, i32, i32
  }
}

module attributes {stable_mosaic.version = 11 : i64} {
  func.func @_probsparse_kernel(%arg0: i32, %arg1: i32, %arg2: memref<1x1x16x8xbf16, #tpu.memory_space<vmem>>, %arg3: memref<1x1x16x8xbf16, #tpu.memory_space<vmem>>, %arg4: memref<1x1x6x8xbf16, #tpu.memory_space<vmem>>, %arg5: memref<1x1x1x6xi32, #tpu.memory_space<vmem>>, %arg6: memref<1x1x16x8xbf16, #tpu.memory_space<vmem>>) attributes {dimension_semantics = [#tpu.dimension_semantics<parallel>, #tpu.dimension_semantics<parallel>], iteration_bounds = array<i64: 2, 4>, scalar_prefetch = 0 : i64, scratch_operands = 0 : i64, tpu.core_type = #tpu.core_type<tc>, window_params = [{transform_indices = @transform_0, window_bounds = array<i64: 1, 1, 16, 8>}, {transform_indices = @transform_1, window_bounds = array<i64: 1, 1, 16, 8>}, {transform_indices = @transform_2, window_bounds = array<i64: 1, 1, 6, 8>}, {transform_indices = @transform_3, window_bounds = array<i64: 1, 1, 1, 6>}, {transform_indices = @transform_4, window_bounds = array<i64: 1, 1, 16, 8>}]} {
    %c0 = arith.constant 0 : index
    %c0_0 = arith.constant 0 : index
    %c0_1 = arith.constant 0 : index
    %c0_2 = arith.constant 0 : index
    %0 = vector.load %arg2[%c0, %c0_0, %c0_1, %c0_2] : memref<1x1x16x8xbf16, #tpu.memory_space<vmem>>, vector<1x1x16x8xbf16>
    %1 = vector.shape_cast %0 : vector<1x1x16x8xbf16> to vector<16x8xbf16>
    %c0_3 = arith.constant 0 : index
    %c0_4 = arith.constant 0 : index
    %c0_5 = arith.constant 0 : index
    %c0_6 = arith.constant 0 : index
    %2 = vector.load %arg3[%c0_3, %c0_4, %c0_5, %c0_6] : memref<1x1x16x8xbf16, #tpu.memory_space<vmem>>, vector<1x1x16x8xbf16>
    %3 = vector.shape_cast %2 : vector<1x1x16x8xbf16> to vector<16x8xbf16>
    %c0_7 = arith.constant 0 : index
    %c0_8 = arith.constant 0 : index
    %c0_9 = arith.constant 0 : index
    %c0_10 = arith.constant 0 : index
    %4 = vector.load %arg4[%c0_7, %c0_8, %c0_9, %c0_10] : memref<1x1x6x8xbf16, #tpu.memory_space<vmem>>, vector<1x1x6x8xbf16>
    %5 = vector.shape_cast %4 : vector<1x1x6x8xbf16> to vector<6x8xbf16>
    %c0_11 = arith.constant 0 : index
    %c0_12 = arith.constant 0 : index
    %c0_13 = arith.constant 0 : index
    %c0_14 = arith.constant 0 : index
    %6 = vector.load %arg5[%c0_11, %c0_12, %c0_13, %c0_14] : memref<1x1x1x6xi32, #tpu.memory_space<vmem>>, vector<1x1x1x6xi32>
    %7 = vector.shape_cast %6 : vector<1x1x1x6xi32> to vector<1x6xi32>
    %cst = arith.constant dense<0.000000e+00> : vector<6x16xf32>
    %8 = tpu.matmul %5, %1, %cst {dimension_numbers = #tpu.dot_dimension_numbers<[1], [1], [0], [0], [0, 0, 1, 0], [], []>} : vector<6x8xbf16>, vector<16x8xbf16>, vector<6x16xf32> -> vector<6x16xf32>
    %cst_15 = arith.constant dense<0xFF800000> : vector<6xf32>
    %9 = vector.multi_reduction <maximumf>, %8, %cst_15 [1] : vector<6x16xf32> to vector<6xf32>
    %10 = vector.shape_cast %9 : vector<6xf32> to vector<6x1xf32>
    %11 = vector.broadcast %10 : vector<6x1xf32> to vector<6x16xf32>
    %12 = arith.subf %8, %11 : vector<6x16xf32>
    %13 = math.exp %12 : vector<6x16xf32>
    %cst_16 = arith.constant dense<0.000000e+00> : vector<6xf32>
    %14 = vector.multi_reduction <add>, %13, %cst_16 [1] : vector<6x16xf32> to vector<6xf32>
    %15 = vector.shape_cast %14 : vector<6xf32> to vector<6x1xf32>
    %16 = vector.broadcast %15 : vector<6x1xf32> to vector<6x16xf32>
    %17 = arith.divf %13, %16 : vector<6x16xf32>
    %18 = arith.truncf %17 : vector<6x16xf32> to vector<6x16xbf16>
    %cst_17 = arith.constant dense<0.000000e+00> : vector<6x8xf32>
    %19 = tpu.matmul %18, %3, %cst_17 {dimension_numbers = #tpu.dot_dimension_numbers<[1], [0], [0], [1], [0, 0, 1, 1], [], []>} : vector<6x16xbf16>, vector<16x8xbf16>, vector<6x8xf32> -> vector<6x8xf32>
    %20 = arith.extf %3 : vector<16x8xbf16> to vector<16x8xf32>
    %cst_18 = arith.constant dense<0.000000e+00> : vector<8xf32>
    %21 = vector.multi_reduction <add>, %20, %cst_18 [0] : vector<16x8xf32> to vector<8xf32>
    %22 = vector.shape_cast %21 : vector<8xf32> to vector<1x8xf32>
    %cst_19 = arith.constant 1.600000e+01 : f32
    %23 = vector.broadcast %cst_19 : f32 to vector<1x8xf32>
    %24 = arith.divf %22, %23 : vector<1x8xf32>
    %25 = tpu.iota {dimensions = array<i32: 0>} : vector<16x6xi32>
    %26 = vector.broadcast %7 : vector<1x6xi32> to vector<16x6xi32>
    %27 = arith.cmpi eq, %25, %26 : vector<16x6xi32>
    %28 = arith.extui %27 : vector<16x6xi1> to vector<16x6xi32>
    %29 = arith.sitofp %28 : vector<16x6xi32> to vector<16x6xf32>
    %30 = arith.truncf %29 : vector<16x6xf32> to vector<16x6xbf16>
    %31 = arith.truncf %19 : vector<6x8xf32> to vector<6x8xbf16>
    %cst_20 = arith.constant dense<0.000000e+00> : vector<16x8xf32>
    %32 = tpu.matmul %30, %31, %cst_20 {dimension_numbers = #tpu.dot_dimension_numbers<[1], [0], [0], [1], [0, 0, 1, 1], [], []>} : vector<16x6xbf16>, vector<6x8xbf16>, vector<16x8xf32> -> vector<16x8xf32>
    %33 = arith.extf %30 : vector<16x6xbf16> to vector<16x6xf32>
    %cst_21 = arith.constant dense<0.000000e+00> : vector<16xf32>
    %34 = vector.multi_reduction <add>, %33, %cst_21 [1] : vector<16x6xf32> to vector<16xf32>
    %35 = vector.shape_cast %34 : vector<16xf32> to vector<16x1xf32>
    %cst_22 = arith.constant 1.000000e+00 : f32
    %36 = vector.broadcast %cst_22 : f32 to vector<16x1xf32>
    %37 = arith.subf %36, %35 : vector<16x1xf32>
    %38 = vector.broadcast %37 : vector<16x1xf32> to vector<16x8xf32>
    %39 = vector.broadcast %24 : vector<1x8xf32> to vector<16x8xf32>
    %40 = arith.mulf %38, %39 : vector<16x8xf32>
    %41 = arith.addf %40, %32 : vector<16x8xf32>
    %42 = arith.truncf %41 : vector<16x8xf32> to vector<16x8xbf16>
    %c0_23 = arith.constant 0 : index
    %c0_24 = arith.constant 0 : index
    %c0_25 = arith.constant 0 : index
    %c0_26 = arith.constant 0 : index
    %43 = vector.load %arg6[%c0_23, %c0_24, %c0_25, %c0_26] : memref<1x1x16x8xbf16, #tpu.memory_space<vmem>>, vector<1x1x16x8xbf16>
    %44 = vector.shape_cast %43 : vector<1x1x16x8xbf16> to vector<16x8xbf16>
    %45 = vector.shape_cast %42 : vector<16x8xbf16> to vector<1x1x16x8xbf16>
    tpu.vector_store %arg6[%c0_23, %c0_24, %c0_25, %c0_26], %45 {strides = array<i32>} : memref<1x1x16x8xbf16, #tpu.memory_space<vmem>>, vector<1x1x16x8xbf16>,
    return
  }
  func.func @transform_0(%arg0: i32, %arg1: i32) -> (i32, i32, i32, i32) {
    %c0_i32 = arith.constant 0 : i32
    %c0_i32_0 = arith.constant 0 : i32
    %c0_i32_1 = arith.constant 0 : i32
    return %arg0, %arg1, %c0_i32, %c0_i32_0 : i32, i32, i32, i32
  }
  func.func @transform_1(%arg0: i32, %arg1: i32) -> (i32, i32, i32, i32) {
    %c0_i32 = arith.constant 0 : i32
    %c0_i32_0 = arith.constant 0 : i32
    %c0_i32_1 = arith.constant 0 : i32
    return %arg0, %arg1, %c0_i32, %c0_i32_0 : i32, i32, i32, i32
  }
  func.func @transform_2(%arg0: i32, %arg1: i32) -> (i32, i32, i32, i32) {
    %c0_i32 = arith.constant 0 : i32
    %c0_i32_0 = arith.constant 0 : i32
    %c0_i32_1 = arith.constant 0 : i32
    return %arg0, %arg1, %c0_i32, %c0_i32_0 : i32, i32, i32, i32
  }
  func.func @transform_3(%arg0: i32, %arg1: i32) -> (i32, i32, i32, i32) {
    %c0_i32 = arith.constant 0 : i32
    %c0_i32_0 = arith.constant 0 : i32
    %c0_i32_1 = arith.constant 0 : i32
    return %arg0, %arg1, %c0_i32, %c0_i32_0 : i32, i32, i32, i32
  }
  func.func @transform_4(%arg0: i32, %arg1: i32) -> (i32, i32, i32, i32) {
    %c0_i32 = arith.constant 0 : i32
    %c0_i32_0 = arith.constant 0 : i32
    %c0_i32_1 = arith.constant 0 : i32
    return %arg0, %arg1, %c0_i32, %c0_i32_0 : i32, i32, i32, i32
  }
}

</mosaic_0001>

<bundles_post_ra>
// kernel: prob_sparse_attention_forward.3
= control target key start
LH: loop header
LB: loop body
LE: loop exit
PB: predicated region body
PF: predicated region fallthrough
CT: control target
= control target key end

     0   :  { %s859_s15 = smov 0   ;;  %s861_s16 = smov 0   ;;  %s925_s0 = inlined_call_operand.vmem [shape: bf16[2,16,32], index: 0, kind: input, shape index: {}]   ;;  %s926_s1 = inlined_call_operand.vmem [shape: bf16[4,32,24], index: 1, kind: input, shape index: {}]   ;;  %s927_s2 = inlined_call_operand.vmem [shape: bf16[2,4,16,8], index: 2, kind: output, shape index: {0}]   ;;  %s928_s3 = inlined_call_operand.vmem [shape: bf16[2,4,16,8], index: 3, kind: output, shape index: {1}]   ;;  %s929_s4 = inlined_call_operand.vmem [shape: bf16[2,4,16,8], index: 4, kind: output, shape index: {2}]  }
   0x1   :  { %s863_s17 = smov 0   ;;  %s865_s18 = smov 0  }
   0x2   :  { %s867_s19 = smov 0  }
   0x3 LB: > { %s27_s20 = sadd.s32 1, %s820_s17  ;;  %s34_s21 = sadd.s32 1, %s824_s18  ;;  %s828_s19 = sphi %s867_s19, %s15_s19   ;;  %s824_s18 = sphi %s865_s18, %s933_s18   ;;  %s820_s17 = sphi %s863_s17, %s932_s17   ;;  %s816_s16 = sphi %s861_s16, %s931_s16   ;;  %s812_s15 = sphi %s859_s15, %s930_s15  }
   0x4   : > { %p28_p0 = scmp.ge.s32.totalorder %s27_s20, 4  ;;  %p702_p1 = scmp.ge.s32.totalorder %s828_s19, 1 }
   0x5   : > { %p215_p2 = scmp.lt.s32.totalorder %s828_s19, 9 }
   0x6   : > { %s935_s20 = smov (%p28_p0, %s27_s20), 0  ;;  %s937_s21 = smov (!%p28_p0, %s34_s21), %s824_s18 }
   0x7   : > { %p216_p3 = pnand %p702_p1, %p215_p2  ;;  %p36_p4 = scmp.ge.s32.totalorder %s937_s21, 2 }
   0x8   : > { %p294_p5 = scmp.lt.s32.totalorder (!%p216_p3), %s812_s15, 3  ;;  %p285_p6 = scmp.lt.s32.totalorder (!%p216_p3), %s816_s16, 1  ;;  %v830_v0 = vmov (!%p216_p3), 0.0   ;;  %vm831_vm0 = vmmov (!%p216_p3), 0   ;;  %vm365_vm1 = vcmask (!%p216_p3), 261120   ;;  %vm420_vm2 = vcmask (!%p216_p3), 60416  }
   0x9   : > { %s939_s21 = smov (%p36_p4, %s937_s21), 0  ;;  %219 = sbr.rel (%p216_p3) target bundleno = 361 (0x169), region = 28 }
   0xa   : > { %735 = vmatprep.subr.bf16.mxu0 (!%p216_p3), %v830_v0  ;;  %739 = vmatprep.mubr.msk.bf16.mxu0 (!%p216_p3), %vm831_vm0, %v830_v0  ;;  %s832_s10 = smov (!%p216_p3), 112   ;;  %s833_s11 = smov (!%p216_p3), 120  }
  0x10   : > { %s941_s15 = smov (!%p294_p5, %s812_s15), 3  ;;  %s943_s16 = smov (!%p285_p6, %s816_s16), 1 }
  0x11   : > { %s727_s22 = sshll.u32 %s941_s15, 4  ;;  %s726_s26 = sshll.u32 %s943_s16, 3 }
  0x12   : > { %s298_s25 = scalar_lea.vmem %s926_s1, %s727_s22  ;;  %s292_s29 = scalar_lea.vmem %s925_s0, %s726_s26 }
  0x13   : > { %v787_v1 = vld [vmem:[%s298_s25] sm:$0xff]   ;;  %v788_v2 = vld [vmem:[%s298_s25 + $0x8] sm:$0xff]   ;;  %s707_s30 = sshll.u32 %s941_s15, 1 }
  0x14   : > { %736 = vmatpush3.bf16.msra.mxu0 %v787_v1  ;;  %v789_v3 = vld [vmem:[%s292_s29] sm:$0xff]   ;;  %s309_s5 = sadd.s32 %s726_s26, %s707_s30 }
  0x15   : > { %737 = vmatprep.subr.bf16.mxu0 %v830_v0  ;;  %s709_s6 = sshll.u32 %s309_s5, 2 }
  0x16   : > { %s311_s9 = scalar_lea.vmem %s927_s2, %s709_s6  ;;  %s339_s14 = scalar_lea.vmem %s929_s4, %s709_s6 }
  0x17   : > { %s325_s22 = scalar_lea.vmem %s928_s3, %s709_s6 }
  0x18   : > { %738 = vmatpush3.bf16.msra.mxu0 %v788_v2 }
  0x1b   : > { %740 = vmatmul.mubr.msk.bf16.vlgmr.msra.gmra.mrb[0].mxu0 %vm365_vm1, %v789_v3 }
  0xee   : > { %v403_v4 = vpop.f32.mrb[0].mxu0 }
  0xef   : > { %v410_v5 = vmul.f32 0.35355338, %v403_v4  ;;  %v741_v6 = vpop.f32.mrb[1].mxu0  ;;  %v730_v7 = vpack.c.bf16 %v403_v4, %v403_v4 }
  0xf0   : > { %v406_v8 = vpop.f32.mrb[2].mxu0 }
  0xf1   : > { %v728_v9 = vpack.c.bf16 %v410_v5, %v410_v5  ;;  %v411_v10 = vmul.f32 0.35355338, %v406_v8  ;;  %437 = vrot.lane.b32.xlu1 %v730_v7, %s832_s10  ;;  %429 = vrot.lane.b32.xlu0 %v730_v7, %s833_s11  ;;  %v742_v11 = vpop.f32.mrb[3].mxu0  ;;  %v731_v13 = vpack.c.bf16 %v406_v8, %v406_v8 }
  0xf3   : > { %v729_v12 = vpack.c.bf16 %v411_v10, %v411_v10  ;;  %421 = vst.msk [vmem:[%s311_s9] sm:$0xf] %vm420_vm2, %v728_v9 }
  0xf5   : > { %439 = vrot.lane.b32.xlu1 %v731_v13, %s832_s10  ;;  %431 = vrot.lane.b32.xlu0 %v731_v13, %s833_s11  ;;  %422 = vst.msk [vmem:[%s311_s9 + $0x4] sm:$0xf] %vm420_vm2, %v729_v12 }
 0x163   : > { %v438_v14 = vpop.permute.xlu1 %437  ;;  %v430_v15 = vpop.permute.xlu0 %429 }
 0x164   : > { %443 = vst.msk [vmem:[%s339_s14] sm:$0xf] %vm420_vm2, %v438_v14  ;;  %435 = vst.msk [vmem:[%s325_s22] sm:$0xf] %vm420_vm2, %v430_v15 }
 0x167   : > { %v440_v16 = vpop.permute.xlu1 %439  ;;  %v432_v17 = vpop.permute.xlu0 %431 }
 0x168   : > { %444 = vst.msk [vmem:[%s339_s14 + $0x4] sm:$0xf] %vm420_vm2, %v440_v16  ;;  %436 = vst.msk [vmem:[%s325_s22 + $0x4] sm:$0xf] %vm420_vm2, %v432_v17 }
 0x169 PF: > { %s15_s19 = sadd.s32 1, %s828_s19   ;;  %s930_s15 = smov %s820_s17 }
 0x16a   : > { %p12_p7 = scmp.ge.s32.totalorder %s15_s19, 10   ;;  %s931_s16 = smov %s824_s18 }
 0x16b   : > { %s932_s17 = smov %s935_s20  ;;  %s933_s18 = smov %s939_s21 }
 0x16c   :  { %14 = sbr.rel (!%p12_p7) target bundleno = 3 (0x3), region = 85 }

// kernel: prob_sparse_attention_forward.5
= control target key start
LH: loop header
LB: loop body
LE: loop exit
PB: predicated region body
PF: predicated region fallthrough
CT: control target
= control target key end

     0   :  { %11 = vsyncpa [#allocation4], 0  ;;  %s1057_s0 = inlined_call_operand.vmem [shape: bf16[2,4,16,8], index: 0, kind: input, shape index: {}]   ;;  %s1058_s1 = inlined_call_operand.vmem [shape: bf16[4,8,32], index: 1, kind: input, shape index: {}]   ;;  %s1059_s2 = inlined_call_operand.vmem [shape: f32[2,16,32], index: 2, kind: input, shape index: {}]   ;;  %s1060_s3 = inlined_call_operand.vmem [shape: f32[1,32], index: 3, kind: input, shape index: {}]   ;;  %s1061_s4 = inlined_call_operand.vmem [shape: f32[1,32], index: 4, kind: input, shape index: {}]   ;;  %s1062_s5 = inlined_call_operand.vmem [shape: f32[1,32], index: 5, kind: input, shape index: {}]   ;;  %s1063_s6 = inlined_call_operand.hbm [shape: f32[2,16,32], index: 6, kind: output, shape index: {}]  }
   0x1   :  { %13 = vsyncpa [#allocation4 + $0x1], 0  ;;  %s882_s21 = smov 0   ;;  %s884_s22 = smov 0  }
   0x2   :  { %s886_s23 = smov 0   ;;  %s888_s24 = smov 0  }
   0x3   :  { %s890_s25 = smov 0   ;;  %s892_s26 = smov 0  }
   0x4   :  { %s894_s27 = smov 0   ;;  %s896_s28 = smov 0  }
   0x5 LB: > { %1071 = sst [smem:[#allocation6_spill]] %s811_s21  ;;  %s630_s29 = sadd.s32 4294967295, %s839_s28   ;;  %s839_s28 = sphi %s896_s28, %s19_s28   ;;  %s835_s27 = sphi %s894_s27, %s1089_s27   ;;  %s831_s26 = sphi %s892_s26, %s1088_s26   ;;  %s827_s25 = sphi %s890_s25, %s1087_s25   ;;  %s823_s24 = sphi %s888_s24, %s1086_s24   ;;  %s819_s23 = sphi %s886_s23, %s1085_s23   ;;  %s815_s22 = sphi %s884_s22, %s1091_s22   ;;  %s811_s21 = sphi %s882_s21, %s1090_s21  }
   0x6   : > { %1072 = sst [smem:[#allocation7_spill]] %s819_s23  ;;  %s631_s30 = sadd.s32 4294967294, %s839_s28  }
   0x7   : > { %1073 = sst [smem:[#allocation8_spill]] %s831_s26  ;;  %s31_s7 = sadd.s32 1, %s831_s26 }
   0x8   : > { %1074 = sst [smem:[#allocation9_spill]] %s835_s27  ;;  %p32_p0 = scmp.ge.s32.totalorder %s31_s7, 4 }
   0x9   : > { %s38_s8 = sadd.s32 1, %s835_s27  ;;  %p204_p1 = scmp.ne.s32.totalorder %s819_s23, %s815_s22 }
   0xa   : > { %p205_p2 = scmp.eq.s32.totalorder %s630_s29, 7  ;;  %s1093_s7 = smov (%p32_p0, %s31_s7), 0 }
   0xb   : > { %1075 = sst [smem:[#allocation10_spill]] %s1093_s7  ;;  %s1095_s8 = smov (!%p32_p0, %s38_s8), %s835_s27 }
   0xc   : > { %p931_p3 = por %p205_p2, %p204_p1  ;;  %p210_p4 = scmp.ne.s32.totalorder %s815_s22, %s811_s21 }
   0xd   : > { %p40_p5 = scmp.ge.s32.totalorder %s1095_s8, 2  ;;  %p211_p6 = scmp.eq.s32.totalorder %s631_s30, 7 }
   0xe   : > { %p634_p7 = scmp.ge.s32.totalorder %s839_s28, 1  ;;  %p275_p8 = scmp.lt.s32.totalorder %s839_s28, 9 }
   0xf   : > { %s1097_s8 = smov (%p40_p5, %s1095_s8), 0  ;;  %p941_p9 = por %p211_p6, %p210_p4 }
  0x10   : > { %1077 = sst [smem:[#allocation11_spill]] %s1097_s8  ;;  %p276_p10 = pnand %p634_p7, %p275_p8 }
  0x11   : > { %s1078_s10 = scalar_select %p941_p9, 1, 0 }
  0x12   : > { %s189_s11 = ssub.s32 %s835_s27, %s1097_s8  ;;  %s194_s12 = sadd.s32 1, %s819_s23 }
  0x13   : > { %1079 = sst [smem:[#allocation12_spill]] %s1078_s10  ;;  %p192_p11 = scmp.eq.s32.totalorder %s189_s11, 0 }
  0x14   : > { %279 = sbr.rel (%p276_p10) target bundleno = 615 (0x267), region = 44  ;;  %s1068_s14 = sand.u32 (!%p276_p10), 1, %s815_s22  }
  0x15   : > { %s949_s13 = scalar_select %p192_p11, %s819_s23, %s194_s12  }
  0x16   : > { %p327_p12 = scmp.lt.s32.totalorder (!%p276_p10), %s827_s25, 1  ;;  %s635_s15 = sshll.u32 (!%p276_p10), %s1068_s14, 4 }
  0x17   : > { %1080 = sst [smem:[#allocation13_spill]] %s949_s13  ;;  %p329_p13 = scmp.lt.s32.totalorder (!%p276_p10), %s823_s24, 3 }
  0x18   : > { %s969_s21 = scalar_lea.vmem (!%p276_p10), [#allocation3], %s635_s15  ;;  %p642_p0 = scmp.ne.s32.totalorder (!%p276_p10), %s823_s24, 0 }
  0x1b   : > { %s328_s16 = scalar_select %p327_p12, %s827_s25, 1 }
  0x1c   : > { %s330_s17 = scalar_select %p329_p13, %s823_s24, 3 }
  0x1d   : > { %s637_s18 = sshll.u32 %s328_s16, 3  ;;  %s654_s19 = sshll.u32 %s328_s16, 4  ;;  %vm360_vm0 = vcmask (!%p642_p0), 261120   ;;  %v841_v0 = vmov (!%p642_p0), 0.0  }
  0x1e   : > { %s636_s20 = sshll.u32 %s330_s17, 1  ;;  %s639_s29 = sshll.u32 %s330_s17, 2  ;;  %361 = vst.msk [vmem:[#allocation2] sm:$0xff] (!%p642_p0), %vm360_vm0, %v841_v0  ;;  %362 = vst.msk [vmem:[#allocation2 + $0x8] sm:$0xff] (!%p642_p0), %vm360_vm0, %v841_v0 }
  0x1f   : > { %s336_s30 = sadd.s32 %s637_s18, %s636_s20  ;;  %s343_s8 = scalar_lea.vmem %s1058_s1, %s639_s29 }
  0x20   : > { %s638_s7 = sshll.u32 %s336_s30, 2  ;;  %s964_s13 = scalar_lea.vmem %s1059_s2, %s654_s19 }
  0x21   : > { %s338_s10 = scalar_lea.vmem %s1057_s0, %s638_s7  ;;  %359 = sbr.rel (%p642_p0) target bundleno = 40 (0x28), region = 48 }
  0x28 PF: > { %v367_v1 = vld [vmem:[%s343_s8] sm:$0xf]  ;;  %vm377_vm1 = vcmask 1043456   ;;  %v842_v2 = vmov 0.0   ;;  %vm843_vm2 = vmmov 0   ;;  %vm373_vm3 = vcmask 64512  }
  0x29   : > { %658 = vmatprep.subr.bf16.mxu0 %v842_v2  ;;  %v379_v3 = vsel %vm377_vm1, %v367_v1, 0  ;;  %660 = vmatprep.mubr.msk.bf16.mxu0 %vm843_vm2, %v842_v2  ;;  %v740_v4 = vld [vmem:[%s338_s10] sm:$0xff]   ;;  %vm424_vm4 = vcmask 261120   ;;  %v364_v7 = vld [vmem:[#allocation2 + $0x8] sm:$0xff]  ;;  %p645_p1 = scmp.ne.s32.totalorder %s823_s24, 3 }
  0x2a   : > { %659 = vmatpush3.bf16.msra.mxu0 %v379_v3  ;;  %v363_v5 = vld [vmem:[#allocation2] sm:$0xff]  ;;  %v443_v18 = vld [vmem:[%s964_s13 + $0x8] sm:$0xff] (!%p645_p1) }
  0x2b   : > { %v646_v14 = vld [vmem:[%s1060_s3] ss:$0 sm:$0xff] (!%p645_p1) }
  0x2c   : > { %v442_v15 = vld [vmem:[%s964_s13] sm:$0xff] (!%p645_p1) }
  0x2d   : > { %661 = vmatmul.mubr.msk.bf16.vlgmr.msra.gmra.mrb[0].mxu0 %vm373_vm3, %v740_v4  ;;  %v647_v41 = vld [vmem:[%s1061_s4] ss:$0 sm:$0xff] (!%p645_p1) }
  0x2e   : > { %v648_v43 = vld [vmem:[%s1062_s5] ss:$0 sm:$0xff] (!%p645_p1) }
  0xff   : > { %430 = sbr.rel (%p645_p1) target bundleno = 589 (0x24d), region = 52 }
 0x100   : > { %v415_v6 = vpop.f32.mrb[0].mxu0 }
 0x101   : > { %v422_v8 = vadd.f32 %v415_v6, %v363_v5  ;;  %v662_v9 = vpop.f32.mrb[1].mxu0 }
 0x102   : > { %v418_v10 = vpop.f32.mrb[2].mxu0 }
 0x103   : > { %425 = vst.msk [vmem:[#allocation2] sm:$0xff] %vm424_vm4, %v422_v8  ;;  %v423_v11 = vadd.f32 %v418_v10, %v364_v7  ;;  %v663_v12 = vpop.f32.mrb[3].mxu0 }
 0x105   : > { %426 = vst.msk [vmem:[#allocation2 + $0x8] sm:$0xff] %vm424_vm4, %v423_v11 }
 0x10a   : > { %v431_v13 = vld [vmem:[#allocation2] sm:$0xff] }
 0x10b   : > { %v440_v16 = vadd.f32 %v646_v14, %v431_v13 }
 0x10c   : > { %v432_v17 = vld [vmem:[#allocation2 + $0x8] sm:$0xff] }
 0x10d   : > { %v441_v19 = vadd.f32 %v646_v14, %v432_v17  ;;  %v444_v20 = vadd.f32 %v442_v15, %v440_v16 }
 0x10f   : > { %v445_v21 = vadd.f32 %v443_v18, %v441_v19  ;;  %v446_v22 = vsel %vm424_vm4, %v444_v20, 0.0 }
 0x110   : > { %447 = vadd.xlane.f32.xlu0 %v446_v22 }
 0x111   : > { %v449_v23 = vsel %vm424_vm4, %v445_v21, 0.0 }
 0x114   : > { %450 = vadd.xlane.f32.xlu0 %v449_v23 }
 0x19d   : > { %v448_v24 = vpop.xlane.xlu0 %447 }
 0x19e   : > { %v453_v25 = vmul.f32 0.03125, %v448_v24 }
 0x1a0   : > { %v455_v26 = vsub.f32 %v444_v20, %v453_v25 }
 0x1a1   : > { %v451_v27 = vpop.xlane.xlu0 %450 }
 0x1a2   : > { %v454_v28 = vmul.f32 0.03125, %v451_v27  ;;  %v457_v29 = vmul.f32 %v455_v26, %v455_v26 }
 0x1a4   : > { %v456_v30 = vsub.f32 %v445_v21, %v454_v28  ;;  %v459_v31 = vsel %vm424_vm4, %v457_v29, 0.0 }
 0x1a5   : > { %460 = vadd.xlane.f32.xlu1 %v459_v31 }
 0x1a6   : > { %v458_v32 = vmul.f32 %v456_v30, %v456_v30 }
 0x1a8   : > { %v462_v33 = vsel %vm424_vm4, %v458_v32, 0.0 }
 0x1a9   : > { %463 = vadd.xlane.f32.xlu1 %v462_v33 }
 0x232   : > { %v461_v34 = vpop.xlane.xlu1 %460 }
 0x233   : > { %v465_v35 = vmul.f32 0.03125, %v461_v34 }
 0x235   : > { %v467_v36 = vadd.f32 1e-06, %v465_v35 }
 0x236   : > { %v464_v37 = vpop.xlane.xlu1 %463 }
 0x237   : > { %741 = vrsqrt.f32 %v467_v36  ;;  %v466_v38 = vmul.f32 0.03125, %v464_v37 }
 0x239   : > { %v468_v39 = vadd.f32 1e-06, %v466_v38 }
 0x23b   : > { %743 = vrsqrt.f32 %v468_v39 }
 0x241   : > { %v742_v40 = vpop.eup %741 }
 0x242   : > { %v471_v42 = vmul.f32 %v742_v40, %v455_v26 }
 0x244   : > { %v480_v44 = vmul.f32 %v647_v41, %v471_v42 }
 0x245   : > { %v744_v45 = vpop.eup %743 }
 0x246   : > { %v489_v46 = vadd.f32 %v648_v43, %v480_v44  ;;  %v472_v47 = vmul.f32 %v744_v45, %v456_v30 }
 0x248   : > { %491 = vst.msk [vmem:[%s969_s21] sm:$0xff] %vm424_vm4, %v489_v46  ;;  %v481_v48 = vmul.f32 %v647_v41, %v472_v47 }
 0x24a   : > { %v490_v49 = vadd.f32 %v648_v43, %v481_v48 }
 0x24c   : > { %492 = vst.msk [vmem:[%s969_s21 + $0x8] sm:$0xff] %vm424_vm4, %v490_v49 }
 0x24d PF: > { %s655_s10 = sshll.u32 %s827_s25, 8  ;;  %s509_s16 = sshll.u32 %s969_s21, 4  ;;  %s1001_s16 = int_to_ptr.vmem [resolvable:$true] %s509_s16 }
 0x24e   : > { %s998_s15 = scalar_lea.hbm %s1063_s6, %s655_s10  ;;  %s1081_s17 = sand.u32 1, %s815_s22  }
 0x24f   : > { %s1005_s18 = scalar_lea.sflag [#allocation4], %s1081_s17  ;;  %s745_s19 = scalar_lea.vmem %s1001_s16, 256 }
 0x250   : > { %p746_p2 = scmp.ne.s32.totalorder %s1001_s16, %s745_s19  ;;  %s844_s25 = smov [#allocation3]  }
 0x251   : > { %s749_s20 = sshll.u32 %s844_s25, 4  ;;  %s750_s20 = int_to_ptr.vmem [resolvable:$false] %s749_s20 }
 0x252   : > { %p747_p4 = pnand %p746_p2, %p931_p3  ;;  %s751_s29 = scalar_lea.vmem %s750_s20, 512 }
 0x253   : > { %p752_p6 = scmp.lt.s32.totalorder %s1001_s16, %s750_s20  ;;  %p753_p7 = scmp.lt.s32.totalorder %s751_s29, %s745_s19 }
 0x254   : > { %p748_p5 = pneg %p747_p4 }
 0x255   : > { %p754_p8 = por %p753_p7, %p752_p6 }
 0x257   : > { %p755_p10 = pnand %p754_p8, %p748_p5 }
 0x259   : > { %758 = shalt.err (!%p755_p10)
}
 0x25a   : > { %s759_s21 = scalar_lea.hbm %s998_s15, 256  ;;  %s763_s12 = scalar_lea.hbm %s1063_s6, 512 }
 0x25b   : > { %p760_p11 = scmp.ne.s32.totalorder %s998_s15, %s759_s21  ;;  %p764_p0 = scmp.lt.u32.totalorder %s998_s15, %s1063_s6 }
 0x25c   : > { %p765_p1 = scmp.lt.u32.totalorder %s763_s12, %s759_s21  ;;  %p767_p4 = scmp.lt.u32.totalorder %s759_s21, %s998_s15 }
 0x25d   : > { %p761_p12 = pnand %p760_p11, %p931_p3 }
 0x25e   : > { %p766_p2 = por %p765_p1, %p764_p0 }
 0x25f   : > { %p762_p13 = pneg %p761_p12 }
 0x260   : > { %p768_p5 = por %p767_p4, %p766_p2 }
 0x262   : > { %p769_p6 = pnand %p768_p5, %p762_p13 }
 0x264   : > { %772 = shalt.err (!%p769_p6)
}
 0x265   : > { %s845_s24 = smov 128   ;;  %s846_s27 = smov 8  }
 0x266   : > { %664 = dma.vmem_to_hbm [thread:$0]  (%p931_p3), %s1001_s16, 256, %s998_s15, %s1005_s18, %s845_s24, %s845_s24, %s846_s27  }
 0x267 PF: > { %s1082_s7 = sld [smem:[#allocation6_spill]]  ;;  %p670_p7 = scmp.ge.s32.totalorder %s839_s28, 2 }
 0x269   : > { %p667_p8 = pnand %p670_p7, %p941_p9 }
 0x26d   : > { %s524_s10 = sand.u32 1, %s1082_s7  }
 0x26e   : > { %s525_s13 = scalar_lea.sflag [#allocation4], %s524_s10 }
 0x26f   : > { %806 = dma.done.wait (!%p667_p8), %s525_s13, 256  }
 0x270   : > { %808 = vsyncadd (!%p667_p8), %s525_s13, 4294967040  ;;  %s19_s28 = sadd.s32 1, %s839_s28   ;;  %s1084_s14 = sld [smem:[#allocation7_spill]] }
 0x271   : > { %p16_p10 = scmp.ge.s32.totalorder %s19_s28, 10   ;;  %s1085_s23 = sld [smem:[#allocation13_spill]] }
 0x272   : > { %s1086_s24 = sld [smem:[#allocation8_spill]]  ;;  %s1087_s25 = sld [smem:[#allocation9_spill]] }
 0x273   : > { %s1088_s26 = sld [smem:[#allocation10_spill]]  ;;  %s1089_s27 = sld [smem:[#allocation11_spill]] }
 0x274   : > { %s1090_s21 = smov %s815_s22  ;;  %18 = sbr.rel (!%p16_p10) target bundleno = 5 (0x5), region = 93 }
 0x276   : > { %s1091_s22 = smov %s1084_s14 }
 0x27b   :  { %530 = vsyncpa [#allocation4], 1 }
 0x27c   :  { %532 = vsyncpa [#allocation4 + $0x1], 1 }

// kernel: prob_sparse_attention_forward.4
= control target key start
LH: loop header
LB: loop body
LE: loop exit
PB: predicated region body
PF: predicated region fallthrough
CT: control target
= control target key end

     0   :  { %s871_s15 = smov 0   ;;  %s873_s16 = smov 0   ;;  %s947_s0 = inlined_call_operand.vmem [shape: bf16[2,4,16,8], index: 0, kind: input, shape index: {}]   ;;  %s948_s1 = inlined_call_operand.vmem [shape: bf16[2,4,16,8], index: 1, kind: input, shape index: {}]   ;;  %s949_s2 = inlined_call_operand.vmem [shape: bf16[2,4,6,8], index: 2, kind: input, shape index: {}]   ;;  %s950_s3 = inlined_call_operand.vmem [shape: s32[2,4,1,6], index: 3, kind: input, shape index: {}]   ;;  %s951_s4 = inlined_call_operand.vmem [shape: bf16[2,4,16,8], index: 4, kind: output, shape index: {}]  }
   0x1   :  { %s875_s17 = smov 0   ;;  %s877_s18 = smov 0  }
   0x2   :  { %s879_s19 = smov 0  }
   0x3 LB: > { %s23_s20 = sadd.s32 1, %s834_s17  ;;  %s26_s21 = sadd.s32 1, %s838_s18  ;;  %s842_s19 = sphi %s879_s19, %s14_s19   ;;  %s838_s18 = sphi %s877_s18, %s955_s18   ;;  %s834_s17 = sphi %s875_s17, %s954_s17   ;;  %s830_s16 = sphi %s873_s16, %s953_s16   ;;  %s826_s15 = sphi %s871_s15, %s952_s15  }
   0x4   : > { %p24_p0 = scmp.ge.s32.totalorder %s23_s20, 4  ;;  %p704_p1 = scmp.ge.s32.totalorder %s842_s19, 1 }
   0x5   : > { %p227_p2 = scmp.lt.s32.totalorder %s842_s19, 9 }
   0x6   : > { %s957_s20 = smov (%p24_p0, %s23_s20), 0  ;;  %s959_s21 = smov (!%p24_p0, %s26_s21), %s838_s18 }
   0x7   : > { %p228_p3 = pnand %p704_p1, %p227_p2  ;;  %p28_p4 = scmp.ge.s32.totalorder %s959_s21, 2 }
   0x8   : > { %p285_p5 = scmp.lt.s32.totalorder (!%p228_p3), %s830_s16, 1  ;;  %p287_p6 = scmp.lt.s32.totalorder (!%p228_p3), %s826_s15, 3  ;;  %v844_v0 = vmov (!%p228_p3), 0.0   ;;  %vm845_vm0 = vmmov (!%p228_p3), 0   ;;  %vm339_vm1 = vcmask (!%p228_p3), 64512   ;;  %vm386_vm2 = vcmask (!%p228_p3), 128000  }
   0x9   : > { %s961_s21 = smov (%p28_p4, %s959_s21), 0  ;;  %231 = sbr.rel (%p228_p3) target bundleno = 996 (0x3e4), region = 36 }
   0xa   : > { %737 = vmatprep.subr.bf16.mxu0 (!%p228_p3), %v844_v0  ;;  %739 = vmatprep.mubr.msk.bf16.mxu0 (!%p228_p3), %vm845_vm0, %v844_v0  ;;  %vm405_vm3 = vcmask (!%p228_p3), 130048   ;;  %v462_v19 = vlaneseq (!%p228_p3)  ;;  %vm477_vm6 = vcmask (!%p228_p3), 48128   ;;  %vm481_vm7 = vcmask (!%p228_p3), 1042432  }
   0xb   : > { %743 = vmatprep.subr.bf16.mxu1 (!%p228_p3), %v844_v0  ;;  %745 = vmatprep.mubr.msk.bf16.mxu1 (!%p228_p3), %vm845_vm0, %v844_v0  ;;  %vm548_vm8 = vcmask (!%p228_p3), 60416  }
   0xc   : > { %v463_v20 = vshrl.u32 (!%p228_p3), %v462_v19, 7 }
   0xe   : > { %v464_v22 = vadd.s32 (!%p228_p3), 8, %v463_v20 }
  0x10   : > { %s963_s16 = smov (!%p285_p5, %s830_s16), 1  ;;  %s965_s15 = smov (!%p287_p6, %s826_s15), 3 }
  0x11   : > { %s706_s22 = sshll.u32 %s963_s16, 3  ;;  %s711_s23 = sshll.u32 %s963_s16, 2 }
  0x12   : > { %s705_s24 = sshll.u32 %s965_s15, 1  ;;  %s905_s27 = sadd.s32 %s711_s23, %s965_s15 }
  0x13   : > { %s291_s25 = sadd.s32 %s706_s22, %s705_s24  ;;  %s712_s5 = sshll.u32 %s905_s27, 2 }
  0x14   : > { %s903_s26 = sshll.u32 %s291_s25, 2  ;;  %s310_s8 = scalar_lea.vmem %s949_s2, %s712_s5 }
  0x15   : > { %s293_s30 = scalar_lea.vmem %s947_s0, %s903_s26  ;;  %v332_v3 = vld [vmem:[%s310_s8] sm:$0x7]  ;;  %s302_s11 = scalar_lea.vmem %s948_s1, %s903_s26 }
  0x16   : > { %v797_v1 = vld [vmem:[%s293_s30] sm:$0xff]   ;;  %s317_s14 = scalar_lea.vmem %s950_s3, %s905_s27  ;;  %s326_s22 = scalar_lea.vmem %s951_s4, %s903_s26 }
  0x17   : > { %v344_v2 = vsel %vm339_vm1, %v797_v1, 0  ;;  %v330_v14 = vld [vmem:[%s302_s11] sm:$0xff]  }
  0x18   : > { %738 = vmatpush3.bf16.xpose.msra.mxu0 %v344_v2  ;;  %744 = vmatpush3.bf16.msra.mxu1 %v330_v14  ;;  %v721_v21 = vld [vmem:[%s317_s14] ss:$0 sm:$0xff]  ;;  %v449_v34 = vunpack.c.l.bf16 %v330_v14  ;;  %v450_v35 = vunpack.c.h.bf16 %v330_v14 }
  0x19   : > { %749 = vmatprep.subr.bf16.mxu1 %v844_v0  ;;  %vm469_vm4 = vcmp.eq.s32.totalorder %v463_v20, %v721_v21  ;;  %vm470_vm5 = vcmp.eq.s32.totalorder %v464_v22, %v721_v21 }
  0x1a   : > { %v722_v23 = vsel %vm469_vm4, 1.0, %v844_v0  ;;  %v723_v25 = vsel %vm470_vm5, 1.0, %v844_v0  ;;  %v451_v36 = vsel %vm339_vm1, %v449_v34, 0.0  ;;  %v452_v37 = vsel %vm339_vm1, %v450_v35, 0.0 }
  0x1b   : > { %v528_v24 = vsel %vm477_vm6, %v722_v23, 0.0  ;;  %v531_v26 = vsel %vm477_vm6, %v723_v25, 0.0  ;;  %v475_v31 = vpack.c.bf16 %v723_v25, %v722_v23  ;;  %v453_v38 = vadd.f32 %v452_v37, %v451_v36 }
  0x1c   : > { %529 = vadd.xlane.f32.xlu1 %v528_v24 }
  0x1d   : > { %v454_v39 = vrot.slane %v453_v38, 4 }
  0x1f   : > { %740 = vmatmul.mubr.msk.bf16.vlgmr.msra.gmra.mrb[0].mxu0 %vm339_vm1, %v332_v3  ;;  %v455_v40 = vadd.f32 %v454_v39, %v453_v38 }
  0x20   : > { %532 = vadd.xlane.f32.xlu1 %v531_v26 }
  0x21   : > { %v456_v41 = vrot.slane %v455_v40, 2 }
  0x23   : > { %v457_v42 = vadd.f32 %v456_v41, %v455_v40 }
  0x25   : > { %v458_v44 = vrot.slane %v457_v42, 1 }
  0x27   : > { %v459_v45 = vadd.f32 %v458_v44, %v457_v42 }
  0x29   : > { %v461_v48 = vmul.f32 0.0625, %v459_v45 }
  0xa9   : > { %v530_v43 = vpop.xlane.xlu1 %529 }
  0xaa   : > { %v534_v47 = vsub.f32 1.0, %v530_v43 }
  0xac   : > { %v536_v51 = vmul.f32 %v534_v47, %v461_v48 }
  0xad   : > { %v533_v46 = vpop.xlane.xlu1 %532 }
  0xae   : > { %v535_v49 = vsub.f32 1.0, %v533_v46 }
  0xb0   : > { %v537_v50 = vmul.f32 %v535_v49, %v461_v48 }
  0xf2   : > { %v380_v4 = vpop.f32.mrb[0].mxu0 }
  0xf3   : > { %v741_v5 = vpop.f32.mrb[1].mxu0  ;;  %v387_v6 = vsel %vm386_vm2, %v380_v4, -inf }
  0xf4   : > { %388 = vmax.xlane.f32.xlu0 %v387_v6  ;;  %v383_v7 = vpop.f32.mrb[2].mxu0 }
  0xf5   : > { %v742_v8 = vpop.f32.mrb[3].mxu0 }
 0x181   : > { %v389_v9 = vpop.xlane.xlu0 %388 }
 0x182   : > { %v390_v10 = vsub.f32 %v380_v4, %v389_v9 }
 0x184   : > { %v391_v11 = vmul.f32 1.442695, %v390_v10 }
 0x186   : > { %800 = vpow2.f32 %v391_v11 }
 0x190   : > { %v801_v12 = vpop.eup %800 }
 0x191   : > { %v393_v13 = vsel %vm386_vm2, %v801_v12, 0.0 }
 0x192   : > { %394 = vadd.xlane.f32.xlu0 %v393_v13 }
 0x21f   : > { %v395_v15 = vpop.xlane.xlu0 %394 }
 0x220   : > { %802 = vrcp.f32 %v395_v15 }
 0x22a   : > { %v803_v16 = vpop.eup %802 }
 0x22b   : > { %v397_v17 = vmul.f32 %v803_v16, %v801_v12 }
 0x22d   : > { %v398_v18 = vpack.c.bf16 %v397_v17, %v397_v17 }
 0x22f   : > { %746 = vmatmul.mubr.msk.bf16.vlgmr.msra.gmra.mrb[0].mxu1 %vm405_vm3, %v398_v18 }
 0x230   : > { %751 = vmatprep.mubr.msk.bf16.mxu1 %vm845_vm0, %v844_v0 }
 0x302   : > { %v443_v27 = vpop.f32.mrb[0].mxu1 }
 0x303   : > { %v476_v28 = vpack.c.bf16 %v443_v27, %v443_v27  ;;  %v747_v29 = vpop.f32.mrb[1].mxu1 }
 0x304   : > { %v446_v30 = vpop.f32.mrb[2].mxu1 }
 0x305   : > { %v483_v32 = vsel %vm481_vm7, %v476_v28, 0  ;;  %v748_v33 = vpop.f32.mrb[3].mxu1 }
 0x306   : > { %750 = vmatpush3.bf16.msra.mxu1 %v483_v32 }
 0x309   : > { %752 = vmatmul.mubr.msk.bf16.vlgmr.msra.gmra.mrb[4].mxu1 %vm477_vm6, %v475_v31 }
 0x3dc   : > { %v519_v52 = vpop.f32.mrb[4].mxu1 }
 0x3dd   : > { %v538_v53 = vadd.f32 %v536_v51, %v519_v52  ;;  %v753_v54 = vpop.f32.mrb[5].mxu1 }
 0x3de   : > { %v522_v55 = vpop.f32.mrb[6].mxu1 }
 0x3df   : > { %v729_v56 = vpack.c.bf16 %v538_v53, %v538_v53  ;;  %v539_v57 = vadd.f32 %v537_v50, %v522_v55  ;;  %v754_v58 = vpop.f32.mrb[7].mxu1 }
 0x3e1   : > { %549 = vst.msk [vmem:[%s326_s22] sm:$0xf] %vm548_vm8, %v729_v56  ;;  %v730_v59 = vpack.c.bf16 %v539_v57, %v539_v57 }
 0x3e3   : > { %550 = vst.msk [vmem:[%s326_s22 + $0x4] sm:$0xf] %vm548_vm8, %v730_v59 }
 0x3e4 PF: > { %s14_s19 = sadd.s32 1, %s842_s19   ;;  %s952_s15 = smov %s834_s17 }
 0x3e5   : > { %p11_p7 = scmp.ge.s32.totalorder %s14_s19, 10   ;;  %s953_s16 = smov %s838_s18 }
 0x3e6   : > { %s954_s17 = smov %s957_s20  ;;  %s955_s18 = smov %s961_s21 }
 0x3e7   :  { %13 = sbr.rel (!%p11_p7) target bundleno = 3 (0x3), region = 75 }

</bundles_post_ra>
